<compile_context>
chip_gen: v5e
topology: v5e:2x2
jax: 0.10.0
libtpu: 0.0.40
codegen_flags: <defaults>
</compile_context>

<pallas_src>
import functools
import math

import jax
import jax.numpy as jnp
from jax.experimental import pallas as pl
from jax.experimental.pallas import tpu as pltpu


# ----------------------------- glue: bilinear upsample (align_corners=True) -----------

def _ac_indices(n_in, n_out):
    if n_in == 1 or n_out == 1:
        z = jnp.zeros((n_out,), jnp.int32)
        return z, z, jnp.zeros((n_out,), jnp.float32)
    src = jnp.arange(n_out, dtype=jnp.float32) * ((n_in - 1) / (n_out - 1))
    i0 = jnp.clip(jnp.floor(src).astype(jnp.int32), 0, n_in - 2)
    return i0, i0 + 1, src - i0.astype(jnp.float32)


def bilinear_upsample_ac_nhwc(x_nhwc, out_hw):
    """nn.Upsample(mode='bilinear', align_corners=True) on an NHWC tensor."""
    Ho, Wo = out_hw
    i0, i1, fh = _ac_indices(x_nhwc.shape[1], Ho)
    j0, j1, fw = _ac_indices(x_nhwc.shape[2], Wo)
    xr = (x_nhwc[:, i0] * (1.0 - fh)[None, :, None, None]
          + x_nhwc[:, i1] * fh[None, :, None, None])
    xo = (xr[:, :, j0] * (1.0 - fw)[None, None, :, None]
          + xr[:, :, j1] * fw[None, None, :, None])
    return xo


# ----------------------------- banded conv weights ------------------------------------

def _banded_conv_weights(w_hwio, W, dtype=jnp.bfloat16):
    """Fold dx taps + width zero-padding of a 3x3 SAME conv into per-dy band matrices.

    Returns B of shape (3, W*Cin, W*Cout) with
        B[dy, (w + dx - 1)*Cin + ci, w*Cout + co] = w_hwio[dy, dx, ci, co]
    where entries whose input column (w + dx - 1) falls outside [0, W) are dropped
    (== zero padding along W).  A row-convolution then becomes
        out_rows = sum_dy padded_rows[dy : dy + H] @ B[dy]
    i.e. 3 fat matmuls instead of 9 tiny per-tap matmuls.
    """
    kh, kw, Cin, Cout = w_hwio.shape
    band = jnp.zeros((kh, W, Cin, W, Cout), jnp.float32)
    for dx in range(kw):
        # diag[i, j] == 1  iff  i == j + dx - 1  (input column feeding output column j)
        diag = jnp.eye(W, W, k=1 - dx, dtype=jnp.float32)
        band = band + diag[None, :, None, :, None] * w_hwio[:, dx][:, None, :, None, :]
    return band.reshape(kh, W * Cin, W * Cout).astype(dtype)


# ----------------------------- Pallas kernel: fused conv/BN/ReLU x 2 ------------------

def _up_conv_kernel(xp_ref, w1_ref, s1_ref, b1_ref, w2_ref, s2_ref, b2_ref,
                    out_ref, y1p_ref, *, H, W, Cout):
    mxu_dt = w1_ref.dtype           # bf16 MXU operands, f32 accumulation
    lanes_out = W * Cout

    # ---- conv1: 3 banded matmuls over the (already height-padded) packed input ------
    acc = jnp.zeros((H, lanes_out), jnp.float32)
    for dy in range(3):
        a = xp_ref[0, dy:dy + H, :].astype(mxu_dt)     # (H, W*Cin) ref-slice load
        acc = acc + jnp.dot(a, w1_ref[dy], preferred_element_type=jnp.float32)
    y1 = jnp.maximum(acc * s1_ref[...] + b1_ref[...], 0.0)   # fused BN + ReLU (f32)

    # ---- conv2: stage y1 with a 1-row zero halo; only the 2 border rows are zeroed --
    y1p_ref[0:1, :] = jnp.zeros((1, lanes_out), jnp.float32)
    y1p_ref[H + 1:H + 2, :] = jnp.zeros((1, lanes_out), jnp.float32)
    y1p_ref[1:H + 1, :] = y1

    acc2 = jnp.zeros((H, lanes_out), jnp.float32)
    for dy in range(3):
        a = y1p_ref[dy:dy + H, :].astype(mxu_dt)
        acc2 = acc2 + jnp.dot(a, w2_ref[dy], preferred_element_type=jnp.float32)
    y2 = jnp.maximum(acc2 * s2_ref[...] + b2_ref[...], 0.0)

    # Lane-dense (W*Cout wide) output block; the wrapper unpacks to NCHW.
    out_ref[...] = y2.reshape(1, H, lanes_out)


def up_conv_pallas(xp_lanes, w1b, s1t, b1t, w2b, s2t, b2t, *, H, W, Cin, Cout):
    """xp_lanes: (N, H+2, W*Cin) f32, height-padded + lane-packed. Returns (N, H, W*Cout)."""
    N = xp_lanes.shape[0]
    kernel = functools.partial(_up_conv_kernel, H=H, W=W, Cout=Cout)
    return pl.pallas_call(
        kernel,
        out_shape=jax.ShapeDtypeStruct((N, H, W * Cout), jnp.float32),
        grid=(N,),
        in_specs=[
            pl.BlockSpec((1, H + 2, W * Cin), lambda n: (n, 0, 0)),
            pl.BlockSpec((3, W * Cin, W * Cout), lambda n: (0, 0, 0)),   # resident
            pl.BlockSpec((1, W * Cout), lambda n: (0, 0)),
            pl.BlockSpec((1, W * Cout), lambda n: (0, 0)),
            pl.BlockSpec((3, W * Cout, W * Cout), lambda n: (0, 0, 0)),  # resident
            pl.BlockSpec((1, W * Cout), lambda n: (0, 0)),
            pl.BlockSpec((1, W * Cout), lambda n: (0, 0)),
        ],
        out_specs=pl.BlockSpec((1, H, W * Cout), lambda n: (n, 0, 0)),
        scratch_shapes=[pltpu.VMEM((H + 2, W * Cout), jnp.float32)],
        compiler_params=pltpu.CompilerParams(dimension_semantics=("parallel",)),
    )(xp_lanes, w1b, s1t, b1t, w2b, s2t, b2t)


# ----------------------------- module forward ----------------------------------------

def up_forward(x1_nchw, x2_nchw, params, scale_factor=2):
    """Up.forward: x1 = upsample(x1); x = cat([x2, x1], dim=1); x = conv(x).

    NCHW in / NCHW out (PyTorch interface); internally everything runs in a lane-packed
    (N, rows, W*C) layout so the Pallas kernel sees dense lanes.
    """
    sh, sw = (scale_factor if isinstance(scale_factor, (tuple, list))
              else (scale_factor, scale_factor))
    N, _, H1, W1 = x1_nchw.shape
    _, _, H, W = x2_nchw.shape
    assert (int(math.floor(H1 * sh)), int(math.floor(W1 * sw))) == (H, W)

    # Glue (plain JAX; fuses under jit): NCHW->NHWC, bilinear upsample, channel concat,
    # lane packing, plus a 1-row height halo (the width halo lives in the banded weights).
    x1 = jnp.transpose(x1_nchw, (0, 2, 3, 1))
    x2 = jnp.transpose(x2_nchw, (0, 2, 3, 1))
    x1u = bilinear_upsample_ac_nhwc(x1, (H, W))
    x = jnp.concatenate([x2, x1u], axis=-1)            # (N, H, W, Cin), x2 channels first
    Cin = x.shape[-1]
    Cout = params["w1"].shape[-1]
    xp_lanes = jnp.pad(x.reshape(N, H, W * Cin), ((0, 0), (1, 1), (0, 0)))

    # Fold taps + width padding into banded bf16 matrices; tile BN affine across W.
    w1b = _banded_conv_weights(params["w1"], W)
    w2b = _banded_conv_weights(params["w2"], W)
    s1t = jnp.tile(params["s1"], W).reshape(1, W * Cout)
    b1t = jnp.tile(params["b1"], W).reshape(1, W * Cout)
    s2t = jnp.tile(params["s2"], W).reshape(1, W * Cout)
    b2t = jnp.tile(params["b2"], W).reshape(1, W * Cout)

    y = up_conv_pallas(xp_lanes, w1b, s1t, b1t, w2b, s2t, b2t,
                       H=H, W=W, Cin=Cin, Cout=Cout)
    return jnp.transpose(y.reshape(N, H, W, Cout), (0, 3, 1, 2))


def make_params(in_channels, out_channels, key):
    k1, k2 = jax.random.split(key, 2)
    # Conv weights in HWIO layout (3, 3, Cin, Cout), bias=False as in the module.
    w1 = 0.1 * jax.random.normal(k1, (3, 3, in_channels, out_channels), jnp.float32)
    w2 = 0.1 * jax.random.normal(k2, (3, 3, out_channels, out_channels), jnp.float32)
    # BatchNorm2d at default init (inference mode), folded to a per-channel affine.
    eps = 1e-5
    gamma = jnp.ones((out_channels,), jnp.float32)
    beta = jnp.zeros((out_channels,), jnp.float32)
    mean = jnp.zeros((out_channels,), jnp.float32)
    var = jnp.ones((out_channels,), jnp.float32)
    scale = gamma / jnp.sqrt(var + eps)
    bias = beta - mean * scale
    return {"w1": w1, "s1": scale, "b1": bias, "w2": w2, "s2": scale, "b2": bias}


def _reference_forward(x1, x2, params, scale_factor=2):
    """Pure-JAX reference (XLA conv) for a sanity check."""
    _, _, H, W = x2.shape
    x1n = jnp.transpose(x1, (0, 2, 3, 1))
    x2n = jnp.transpose(x2, (0, 2, 3, 1))
    x1u = bilinear_upsample_ac_nhwc(x1n, (H, W))
    x = jnp.concatenate([x2n, x1u], axis=-1)
    dn = ("NHWC", "HWIO", "NHWC")
    y = jax.lax.conv_general_dilated(x, params["w1"], (1, 1), "SAME", dimension_numbers=dn)
    y = jnp.maximum(y * params["s1"] + params["b1"], 0.0)
    y = jax.lax.conv_general_dilated(y, params["w2"], (1, 1), "SAME", dimension_numbers=dn)
    y = jnp.maximum(y * params["s2"] + params["b2"], 0.0)
    return jnp.transpose(y, (0, 3, 1, 2))


if __name__ == "__main__":
    # Up(in_channels=8, out_channels=4): x1 carries 4 channels at half resolution,
    # x2 carries 4 channels at full resolution; concat gives 8 = in_channels.
    in_channels, out_channels = 8, 4
    N, H2, W2 = 2, 16, 16           # x2 spatial
    H1, W1 = H2 // 2, W2 // 2       # x1 spatial (before 2x upsample)

    key = jax.random.PRNGKey(0)
    kx1, kx2, kp = jax.random.split(key, 3)
    x1 = jax.random.normal(kx1, (N, in_channels // 2, H1, W1), jnp.float32)
    x2 = jax.random.normal(kx2, (N, in_channels // 2, H2, W2), jnp.float32)
    params = make_params(in_channels, out_channels, kp)

    fwd = jax.jit(functools.partial(up_forward, scale_factor=2))
    out = jax.block_until_ready(fwd(x1, x2, params))
    ref = jax.block_until_ready(_reference_forward(x1, x2, params))

    assert out.shape == (N, out_channels, H2, W2), out.shape
    assert bool(jnp.all(jnp.isfinite(out)))
    # Tolerance reflects bf16 MXU operands vs the f32 XLA reference.
    err = float(jnp.max(jnp.abs(out - ref)))
    assert bool(jnp.allclose(out, ref, atol=5e-2, rtol=5e-2)), err

    print("KERNEL_OK")
</pallas_src>

<mosaic_0001>
module attributes {stable_mosaic.version = 11 : i64} {
  func.func @_up_conv_kernel(%arg0: i32, %arg1: memref<1x18x128xf32, #tpu.memory_space<vmem>>, %arg2: memref<3x128x64xbf16, #tpu.memory_space<vmem>>, %arg3: memref<1x64xf32, #tpu.memory_space<vmem>>, %arg4: memref<1x64xf32, #tpu.memory_space<vmem>>, %arg5: memref<3x64x64xbf16, #tpu.memory_space<vmem>>, %arg6: memref<1x64xf32, #tpu.memory_space<vmem>>, %arg7: memref<1x64xf32, #tpu.memory_space<vmem>>, %arg8: memref<1x16x64xf32, #tpu.memory_space<vmem>>, %arg9: memref<18x64xf32, #tpu.memory_space<vmem>>) attributes {dimension_semantics = [#tpu.dimension_semantics<parallel>], iteration_bounds = array<i64: 2>, scalar_prefetch = 0 : i64, scratch_operands = 1 : i64, tpu.core_type = #tpu.core_type<tc>, window_params = [{transform_indices = @transform_0, window_bounds = array<i64: 1, 18, 128>}, {pipeline_mode = #tpu.pipeline_mode<synchronous>, transform_indices = @transform_1, window_bounds = array<i64: 3, 128, 64>}, {pipeline_mode = #tpu.pipeline_mode<synchronous>, transform_indices = @transform_2, window_bounds = array<i64: 1, 64>}, {pipeline_mode = #tpu.pipeline_mode<synchronous>, transform_indices = @transform_3, window_bounds = array<i64: 1, 64>}, {pipeline_mode = #tpu.pipeline_mode<synchronous>, transform_indices = @transform_4, window_bounds = array<i64: 3, 64, 64>}, {pipeline_mode = #tpu.pipeline_mode<synchronous>, transform_indices = @transform_5, window_bounds = array<i64: 1, 64>}, {pipeline_mode = #tpu.pipeline_mode<synchronous>, transform_indices = @transform_6, window_bounds = array<i64: 1, 64>}, {transform_indices = @transform_7, window_bounds = array<i64: 1, 16, 64>}]} {
    %cst = arith.constant 0.000000e+00 : f32
    %0 = vector.broadcast %cst : f32 to vector<16x64xf32>
    %c0 = arith.constant 0 : index
    %c0_0 = arith.constant 0 : index
    %c0_1 = arith.constant 0 : index
    %1 = vector.load %arg1[%c0, %c0_0, %c0_1] : memref<1x18x128xf32, #tpu.memory_space<vmem>>, vector<1x16x128xf32>
    %2 = vector.shape_cast %1 : vector<1x16x128xf32> to vector<16x128xf32>
    %3 = arith.truncf %2 : vector<16x128xf32> to vector<16x128xbf16>
    %c0_2 = arith.constant 0 : index
    %c0_3 = arith.constant 0 : index
    %c0_4 = arith.constant 0 : index
    %4 = vector.load %arg2[%c0_2, %c0_3, %c0_4] : memref<3x128x64xbf16, #tpu.memory_space<vmem>>, vector<1x128x64xbf16>
    %5 = vector.shape_cast %4 : vector<1x128x64xbf16> to vector<128x64xbf16>
    %cst_5 = arith.constant dense<0.000000e+00> : vector<16x64xf32>
    %6 = tpu.matmul %3, %5, %cst_5 {dimension_numbers = #tpu.dot_dimension_numbers<[1], [0], [0], [1], [0, 0, 1, 1], [], []>} : vector<16x128xbf16>, vector<128x64xbf16>, vector<16x64xf32> -> vector<16x64xf32>
    %7 = arith.addf %0, %6 : vector<16x64xf32>
    %c0_6 = arith.constant 0 : index
    %c1 = arith.constant 1 : index
    %c0_7 = arith.constant 0 : index
    %8 = vector.load %arg1[%c0_6, %c1, %c0_7] : memref<1x18x128xf32, #tpu.memory_space<vmem>>, vector<1x16x128xf32>
    %9 = vector.shape_cast %8 : vector<1x16x128xf32> to vector<16x128xf32>
    %10 = arith.truncf %9 : vector<16x128xf32> to vector<16x128xbf16>
    %c1_8 = arith.constant 1 : index
    %c0_9 = arith.constant 0 : index
    %c0_10 = arith.constant 0 : index
    %11 = vector.load %arg2[%c1_8, %c0_9, %c0_10] : memref<3x128x64xbf16, #tpu.memory_space<vmem>>, vector<1x128x64xbf16>
    %12 = vector.shape_cast %11 : vector<1x128x64xbf16> to vector<128x64xbf16>
    %cst_11 = arith.constant dense<0.000000e+00> : vector<16x64xf32>
    %13 = tpu.matmul %10, %12, %cst_11 {dimension_numbers = #tpu.dot_dimension_numbers<[1], [0], [0], [1], [0, 0, 1, 1], [], []>} : vector<16x128xbf16>, vector<128x64xbf16>, vector<16x64xf32> -> vector<16x64xf32>
    %14 = arith.addf %7, %13 : vector<16x64xf32>
    %c0_12 = arith.constant 0 : index
    %c2 = arith.constant 2 : index
    %c0_13 = arith.constant 0 : index
    %15 = vector.load %arg1[%c0_12, %c2, %c0_13] : memref<1x18x128xf32, #tpu.memory_space<vmem>>, vector<1x16x128xf32>
    %16 = vector.shape_cast %15 : vector<1x16x128xf32> to vector<16x128xf32>
    %17 = arith.truncf %16 : vector<16x128xf32> to vector<16x128xbf16>
    %c2_14 = arith.constant 2 : index
    %c0_15 = arith.constant 0 : index
    %c0_16 = arith.constant 0 : index
    %18 = vector.load %arg2[%c2_14, %c0_15, %c0_16] : memref<3x128x64xbf16, #tpu.memory_space<vmem>>, vector<1x128x64xbf16>
    %19 = vector.shape_cast %18 : vector<1x128x64xbf16> to vector<128x64xbf16>
    %cst_17 = arith.constant dense<0.000000e+00> : vector<16x64xf32>
    %20 = tpu.matmul %17, %19, %cst_17 {dimension_numbers = #tpu.dot_dimension_numbers<[1], [0], [0], [1], [0, 0, 1, 1], [], []>} : vector<16x128xbf16>, vector<128x64xbf16>, vector<16x64xf32> -> vector<16x64xf32>
    %21 = arith.addf %14, %20 : vector<16x64xf32>
    %c0_18 = arith.constant 0 : index
    %c0_19 = arith.constant 0 : index
    %22 = vector.load %arg3[%c0_18, %c0_19] : memref<1x64xf32, #tpu.memory_space<vmem>>, vector<1x64xf32>
    %23 = vector.broadcast %22 : vector<1x64xf32> to vector<16x64xf32>
    %24 = arith.mulf %21, %23 : vector<16x64xf32>
    %c0_20 = arith.constant 0 : index
    %c0_21 = arith.constant 0 : index
    %25 = vector.load %arg4[%c0_20, %c0_21] : memref<1x64xf32, #tpu.memory_space<vmem>>, vector<1x64xf32>
    %26 = vector.broadcast %25 : vector<1x64xf32> to vector<16x64xf32>
    %27 = arith.addf %24, %26 : vector<16x64xf32>
    %cst_22 = arith.constant 0.000000e+00 : f32
    %28 = vector.broadcast %cst_22 : f32 to vector<16x64xf32>
    %29 = arith.maximumf %27, %28 : vector<16x64xf32>
    %cst_23 = arith.constant 0.000000e+00 : f32
    %30 = vector.broadcast %cst_23 : f32 to vector<1x64xf32>
    %c0_24 = arith.constant 0 : index
    %c0_25 = arith.constant 0 : index
    %31 = vector.load %arg9[%c0_24, %c0_25] : memref<18x64xf32, #tpu.memory_space<vmem>>, vector<1x64xf32>
    tpu.vector_store %arg9[%c0_24, %c0_25], %30 {strides = array<i32>} : memref<18x64xf32, #tpu.memory_space<vmem>>, vector<1x64xf32>,
    %cst_26 = arith.constant 0.000000e+00 : f32
    %32 = vector.broadcast %cst_26 : f32 to vector<1x64xf32>
    %c17 = arith.constant 17 : index
    %c0_27 = arith.constant 0 : index
    %33 = vector.load %arg9[%c17, %c0_27] : memref<18x64xf32, #tpu.memory_space<vmem>>, vector<1x64xf32>
    tpu.vector_store %arg9[%c17, %c0_27], %32 {strides = array<i32>} : memref<18x64xf32, #tpu.memory_space<vmem>>, vector<1x64xf32>,
    %c1_28 = arith.constant 1 : index
    %c0_29 = arith.constant 0 : index
    %34 = vector.load %arg9[%c1_28, %c0_29] : memref<18x64xf32, #tpu.memory_space<vmem>>, vector<16x64xf32>
    tpu.vector_store %arg9[%c1_28, %c0_29], %29 {strides = array<i32>} : memref<18x64xf32, #tpu.memory_space<vmem>>, vector<16x64xf32>,
    %cst_30 = arith.constant 0.000000e+00 : f32
    %35 = vector.broadcast %cst_30 : f32 to vector<16x64xf32>
    %c0_31 = arith.constant 0 : index
    %c0_32 = arith.constant 0 : index
    %36 = vector.load %arg9[%c0_31, %c0_32] : memref<18x64xf32, #tpu.memory_space<vmem>>, vector<16x64xf32>
    %37 = arith.truncf %36 : vector<16x64xf32> to vector<16x64xbf16>
    %c0_33 = arith.constant 0 : index
    %c0_34 = arith.constant 0 : index
    %c0_35 = arith.constant 0 : index
    %38 = vector.load %arg5[%c0_33, %c0_34, %c0_35] : memref<3x64x64xbf16, #tpu.memory_space<vmem>>, vector<1x64x64xbf16>
    %39 = vector.shape_cast %38 : vector<1x64x64xbf16> to vector<64x64xbf16>
    %cst_36 = arith.constant dense<0.000000e+00> : vector<16x64xf32>
    %40 = tpu.matmul %37, %39, %cst_36 {dimension_numbers = #tpu.dot_dimension_numbers<[1], [0], [0], [1], [0, 0, 1, 1], [], []>} : vector<16x64xbf16>, vector<64x64xbf16>, vector<16x64xf32> -> vector<16x64xf32>
    %41 = arith.addf %35, %40 : vector<16x64xf32>
    %c1_37 = arith.constant 1 : index
    %c0_38 = arith.constant 0 : index
    %42 = vector.load %arg9[%c1_37, %c0_38] : memref<18x64xf32, #tpu.memory_space<vmem>>, vector<16x64xf32>
    %43 = arith.truncf %42 : vector<16x64xf32> to vector<16x64xbf16>
    %c1_39 = arith.constant 1 : index
    %c0_40 = arith.constant 0 : index
    %c0_41 = arith.constant 0 : index
    %44 = vector.load %arg5[%c1_39, %c0_40, %c0_41] : memref<3x64x64xbf16, #tpu.memory_space<vmem>>, vector<1x64x64xbf16>
    %45 = vector.shape_cast %44 : vector<1x64x64xbf16> to vector<64x64xbf16>
    %cst_42 = arith.constant dense<0.000000e+00> : vector<16x64xf32>
    %46 = tpu.matmul %43, %45, %cst_42 {dimension_numbers = #tpu.dot_dimension_numbers<[1], [0], [0], [1], [0, 0, 1, 1], [], []>} : vector<16x64xbf16>, vector<64x64xbf16>, vector<16x64xf32> -> vector<16x64xf32>
    %47 = arith.addf %41, %46 : vector<16x64xf32>
    %c2_43 = arith.constant 2 : index
    %c0_44 = arith.constant 0 : index
    %48 = vector.load %arg9[%c2_43, %c0_44] : memref<18x64xf32, #tpu.memory_space<vmem>>, vector<16x64xf32>
    %49 = arith.truncf %48 : vector<16x64xf32> to vector<16x64xbf16>
    %c2_45 = arith.constant 2 : index
    %c0_46 = arith.constant 0 : index
    %c0_47 = arith.constant 0 : index
    %50 = vector.load %arg5[%c2_45, %c0_46, %c0_47] : memref<3x64x64xbf16, #tpu.memory_space<vmem>>, vector<1x64x64xbf16>
    %51 = vector.shape_cast %50 : vector<1x64x64xbf16> to vector<64x64xbf16>
    %cst_48 = arith.constant dense<0.000000e+00> : vector<16x64xf32>
    %52 = tpu.matmul %49, %51, %cst_48 {dimension_numbers = #tpu.dot_dimension_numbers<[1], [0], [0], [1], [0, 0, 1, 1], [], []>} : vector<16x64xbf16>, vector<64x64xbf16>, vector<16x64xf32> -> vector<16x64xf32>
    %53 = arith.addf %47, %52 : vector<16x64xf32>
    %c0_49 = arith.constant 0 : index
    %c0_50 = arith.constant 0 : index
    %54 = vector.load %arg6[%c0_49, %c0_50] : memref<1x64xf32, #tpu.memory_space<vmem>>, vector<1x64xf32>
    %55 = vector.broadcast %54 : vector<1x64xf32> to vector<16x64xf32>
    %56 = arith.mulf %53, %55 : vector<16x64xf32>
    %c0_51 = arith.constant 0 : index
    %c0_52 = arith.constant 0 : index
    %57 = vector.load %arg7[%c0_51, %c0_52] : memref<1x64xf32, #tpu.memory_space<vmem>>, vector<1x64xf32>
    %58 = vector.broadcast %57 : vector<1x64xf32> to vector<16x64xf32>
    %59 = arith.addf %56, %58 : vector<16x64xf32>
    %cst_53 = arith.constant 0.000000e+00 : f32
    %60 = vector.broadcast %cst_53 : f32 to vector<16x64xf32>
    %61 = arith.maximumf %59, %60 : vector<16x64xf32>
    %62 = vector.shape_cast %61 : vector<16x64xf32> to vector<1x16x64xf32>
    %c0_54 = arith.constant 0 : index
    %c0_55 = arith.constant 0 : index
    %c0_56 = arith.constant 0 : index
    %63 = vector.load %arg8[%c0_54, %c0_55, %c0_56] : memref<1x16x64xf32, #tpu.memory_space<vmem>>, vector<1x16x64xf32>
    tpu.vector_store %arg8[%c0_54, %c0_55, %c0_56], %62 {strides = array<i32>} : memref<1x16x64xf32, #tpu.memory_space<vmem>>, vector<1x16x64xf32>,
    return
  }
  func.func @transform_0(%arg0: i32) -> (i32, i32, i32) {
    %c0_i32 = arith.constant 0 : i32
    %c0_i32_0 = arith.constant 0 : i32
    %c0_i32_1 = arith.constant 0 : i32
    return %arg0, %c0_i32, %c0_i32_0 : i32, i32, i32
  }
  func.func @transform_1(%arg0: i32) -> (i32, i32, i32) {
    %c0_i32 = arith.constant 0 : i32
    %c0_i32_0 = arith.constant 0 : i32
    %c0_i32_1 = arith.constant 0 : i32
    %c0_i32_2 = arith.constant 0 : i32
    return %c0_i32, %c0_i32_0, %c0_i32_1 : i32, i32, i32
  }
  func.func @transform_2(%arg0: i32) -> (i32, i32) {
    %c0_i32 = arith.constant 0 : i32
    %c0_i32_0 = arith.constant 0 : i32
    %c0_i32_1 = arith.constant 0 : i32
    return %c0_i32, %c0_i32_0 : i32, i32
  }
  func.func @transform_3(%arg0: i32) -> (i32, i32) {
    %c0_i32 = arith.constant 0 : i32
    %c0_i32_0 = arith.constant 0 : i32
    %c0_i32_1 = arith.constant 0 : i32
    return %c0_i32, %c0_i32_0 : i32, i32
  }
  func.func @transform_4(%arg0: i32) -> (i32, i32, i32) {
    %c0_i32 = arith.constant 0 : i32
    %c0_i32_0 = arith.constant 0 : i32
    %c0_i32_1 = arith.constant 0 : i32
    %c0_i32_2 = arith.constant 0 : i32
    return %c0_i32, %c0_i32_0, %c0_i32_1 : i32, i32, i32
  }
  func.func @transform_5(%arg0: i32) -> (i32, i32) {
    %c0_i32 = arith.constant 0 : i32
    %c0_i32_0 = arith.constant 0 : i32
    %c0_i32_1 = arith.constant 0 : i32
    return %c0_i32, %c0_i32_0 : i32, i32
  }
  func.func @transform_6(%arg0: i32) -> (i32, i32) {
    %c0_i32 = arith.constant 0 : i32
    %c0_i32_0 = arith.constant 0 : i32
    %c0_i32_1 = arith.constant 0 : i32
    return %c0_i32, %c0_i32_0 : i32, i32
  }
  func.func @transform_7(%arg0: i32) -> (i32, i32, i32) {
    %c0_i32 = arith.constant 0 : i32
    %c0_i32_0 = arith.constant 0 : i32
    %c0_i32_1 = arith.constant 0 : i32
    return %arg0, %c0_i32, %c0_i32_0 : i32, i32, i32
  }
}

</mosaic_0001>

<bundles_post_ra>
// kernel: tile.23
= control target key start
LH: loop header
LB: loop body
LE: loop exit
PB: predicated region body
PF: predicated region fallthrough
CT: control target
= control target key end

     0   :  { %s28_s0 = inlined_call_operand.vmem [shape: f32[4], index: 0, kind: input, shape index: {}]   ;;  %s29_s1 = inlined_call_operand.vmem [shape: f32[16,4], index: 1, kind: output, shape index: {}]  }
   0x1   :  { %v4_v0 = vld [vmem:[%s28_s0] ss:$0 sm:$0xff] }
   0x2   :  { %5 = vst [vmem:[%s29_s1] sm:$0xff] %v4_v0 }
   0x3   :  { %8 = vst [vmem:[%s29_s1 + $0x8] sm:$0xff] %v4_v0 }

// kernel: tile.24
= control target key start
LH: loop header
LB: loop body
LE: loop exit
PB: predicated region body
PF: predicated region fallthrough
CT: control target
= control target key end

     0   :  { %s131_s10 = smov 60   ;;  %s132_s11 = smov 52   ;;  %vm3_vm0 = vcmask 31744   ;;  %vm9_vm1 = vcmask 523744   ;;  %vm15_vm2 = vcmask 490944   ;;  %vm21_vm3 = vcmask 458144   ;;  %s207_s0 = inlined_call_operand.vmem [shape: f32[16,4], index: 0, kind: input, shape index: {}]   ;;  %s208_s1 = inlined_call_operand.vmem [shape: f32[1,64], index: 1, kind: output, shape index: {}]  }
   0x1   :  { %v101_v0 = vld [vmem:[%s207_s0 + $0xf] sm:$0x1]   ;;  %v103_v1 = vld [vmem:[%s207_s0 + $0xd] sm:$0x1]   ;;  %v105_v2 = vld [vmem:[%s207_s0 + $0xb] sm:$0x1]  }
   0x2   :  { %7 = vrot.lane.b32.xlu0 %v101_v0, %s131_s10  ;;  %19 = vrot.lane.b32.xlu1 %v103_v1, %s132_s11  ;;  %s133_s14 = smov 44   ;;  %v102_v3 = vld [vmem:[%s207_s0 + $0xe] sm:$0x1]   ;;  %v104_v4 = vld [vmem:[%s207_s0 + $0xc] sm:$0x1]   ;;  %s134_s19 = smov 56  }
   0x3   :  { %31 = vrot.lane.b32.xlu2 %v105_v2, %s133_s14  ;;  %s135_s20 = smov 48   ;;  %v106_v5 = vld [vmem:[%s207_s0 + $0xa] sm:$0x1]   ;;  %s136_s23 = smov 40   ;;  %v107_v6 = vld [vmem:[%s207_s0 + $0x9] sm:$0x1]  }
   0x4   :  { %v108_v7 = vld [vmem:[%s207_s0 + $0x8] sm:$0x1]   ;;  %s137_s28 = smov 36   ;;  %s138_s29 = smov 32   ;;  %v109_v8 = vld [vmem:[%s207_s0 + $0x7] sm:$0x1]  }
   0x5   :  { %s139_s3 = smov 28   ;;  %v110_v9 = vld [vmem:[%s207_s0 + $0x6] sm:$0x1]   ;;  %v111_v10 = vld [vmem:[%s207_s0 + $0x5] sm:$0x1]   ;;  %s140_s8 = smov 24  }
   0x6   :  { %s141_s9 = smov 20   ;;  %v112_v11 = vld [vmem:[%s207_s0 + $0x4] sm:$0x1]   ;;  %s142_s12 = smov 16   ;;  %v113_v12 = vld [vmem:[%s207_s0 + $0x3] sm:$0x1]  }
   0x7   :  { %v114_v13 = vld [vmem:[%s207_s0 + $0x2] sm:$0x1]   ;;  %s143_s17 = smov 12   ;;  %s144_s18 = smov 8   ;;  %v115_v14 = vld [vmem:[%s207_s0 + $0x1] sm:$0x1]  }
   0x8   :  { %s145_s21 = smov 4   ;;  %v2_v15 = vld [vmem:[%s207_s0] sm:$0x1]   ;;  %vm27_vm4 = vcmask 425344   ;;  %vm33_vm5 = vcmask 392544   ;;  %vm39_vm6 = vcmask 359744  }
   0x9   :  { %4 = vst.msk [vmem:[#allocation0] sm:$0x1] %vm3_vm0, %v2_v15   ;;  %vm45_vm7 = vcmask 326944   ;;  %vm51_vm8 = vcmask 294144   ;;  %vm57_vm9 = vcmask 261344   ;;  %vm63_vm10 = vcmask 228544  }
   0xa   :  { %13 = vrot.lane.b32.xlu0 %v102_v3, %s134_s19  ;;  %25 = vrot.lane.b32.xlu1 %v104_v4, %s135_s20  ;;  %vm69_vm11 = vcmask 195744   ;;  %vm75_vm12 = vcmask 162944   ;;  %vm81_vm13 = vcmask 130144   ;;  %vm87_vm14 = vcmask 97344  }
   0xb   :  { %37 = vrot.lane.b32.xlu2 %v106_v5, %s136_s23  ;;  %vm93_vm15 = vcmask 64544  }
  0x12   :  { %43 = vrot.lane.b32.xlu0 %v107_v6, %s137_s28  ;;  %49 = vrot.lane.b32.xlu1 %v108_v7, %s138_s29 }
  0x13   :  { %55 = vrot.lane.b32.xlu2 %v109_v8, %s139_s3 }
  0x1a   :  { %61 = vrot.lane.b32.xlu0 %v110_v9, %s140_s8  ;;  %67 = vrot.lane.b32.xlu1 %v111_v10, %s141_s9 }
  0x1b   :  { %73 = vrot.lane.b32.xlu2 %v112_v11, %s142_s12 }
  0x22   :  { %79 = vrot.lane.b32.xlu0 %v113_v12, %s143_s17  ;;  %85 = vrot.lane.b32.xlu1 %v114_v13, %s144_s18 }
  0x23   :  { %91 = vrot.lane.b32.xlu2 %v115_v14, %s145_s21 }
  0x5d   :  { %v32_v16 = vpop.permute.xlu2 %31  }
  0x65   :  { %v38_v17 = vpop.permute.xlu2 %37  }
  0x6d   :  { %v56_v18 = vpop.permute.xlu2 %55  }
  0x74   :  { %v8_v19 = vpop.permute.xlu0 %7   ;;  %v20_v20 = vpop.permute.xlu1 %19  }
  0x75   :  { %10 = vst.msk [vmem:[#allocation0] sm:$0x1] %vm9_vm1, %v8_v19   ;;  %v74_v21 = vpop.permute.xlu2 %73  }
  0x7c   :  { %v14_v22 = vpop.permute.xlu0 %13   ;;  %v26_v23 = vpop.permute.xlu1 %25  }
  0x7d   :  { %16 = vst.msk [vmem:[#allocation0] sm:$0x1] %vm15_vm2, %v14_v22   ;;  %v92_v24 = vpop.permute.xlu2 %91  }
  0x7e   :  { %22 = vst.msk [vmem:[#allocation0] sm:$0x1] %vm21_vm3, %v20_v20  }
  0x7f   :  { %28 = vst.msk [vmem:[#allocation0] sm:$0x1] %vm27_vm4, %v26_v23  }
  0x80   :  { %34 = vst.msk [vmem:[#allocation0] sm:$0x1] %vm33_vm5, %v32_v16  }
  0x81   :  { %40 = vst.msk [vmem:[#allocation0] sm:$0x1] %vm39_vm6, %v38_v17  }
  0x84   :  { %v44_v25 = vpop.permute.xlu0 %43   ;;  %v50_v26 = vpop.permute.xlu1 %49  }
  0x85   :  { %46 = vst.msk [vmem:[#allocation0] sm:$0x1] %vm45_vm7, %v44_v25  }
  0x86   :  { %52 = vst.msk [vmem:[#allocation0] sm:$0x1] %vm51_vm8, %v50_v26  }
  0x87   :  { %58 = vst.msk [vmem:[#allocation0] sm:$0x1] %vm57_vm9, %v56_v18  }
  0x8c   :  { %v62_v27 = vpop.permute.xlu0 %61   ;;  %v68_v28 = vpop.permute.xlu1 %67  }
  0x8d   :  { %64 = vst.msk [vmem:[#allocation0] sm:$0x1] %vm63_vm10, %v62_v27  }
  0x8e   :  { %70 = vst.msk [vmem:[#allocation0] sm:$0x1] %vm69_vm11, %v68_v28  }
  0x8f   :  { %76 = vst.msk [vmem:[#allocation0] sm:$0x1] %vm75_vm12, %v74_v21  }
  0x94   :  { %v80_v29 = vpop.permute.xlu0 %79   ;;  %v86_v30 = vpop.permute.xlu1 %85  }
  0x95   :  { %82 = vst.msk [vmem:[#allocation0] sm:$0x1] %vm81_vm13, %v80_v29  }
  0x96   :  { %88 = vst.msk [vmem:[#allocation0] sm:$0x1] %vm87_vm14, %v86_v30  }
  0x97   :  { %94 = vst.msk [vmem:[#allocation0] sm:$0x1] %vm93_vm15, %v92_v24  }
  0x9e   :  { %v97_v31 = vld [vmem:[#allocation0] sm:$0x1] }
  0x9f   :  { %100 = vst [vmem:[%s208_s1] sm:$0x1] %v97_v31 }

// kernel: up_forward.1
= control target key start
LH: loop header
LB: loop body
LE: loop exit
PB: predicated region body
PF: predicated region fallthrough
CT: control target
= control target key end

     0   :  { %s1083_s24 = smov 0   ;;  %s1235_s0 = inlined_call_operand.vmem [shape: f32[2,18,128], index: 0, kind: input, shape index: {}]   ;;  %s1236_s1 = inlined_call_operand.vmem [shape: bf16[3,128,64], index: 1, kind: input, shape index: {}]   ;;  %s1237_s2 = inlined_call_operand.vmem [shape: f32[1,64], index: 2, kind: input, shape index: {}]   ;;  %s1238_s3 = inlined_call_operand.vmem [shape: f32[1,64], index: 3, kind: input, shape index: {}]   ;;  %s1239_s4 = inlined_call_operand.vmem [shape: bf16[3,64,64], index: 4, kind: input, shape index: {}]   ;;  %s1240_s5 = inlined_call_operand.vmem [shape: f32[1,64], index: 5, kind: input, shape index: {}]   ;;  %s1241_s6 = inlined_call_operand.vmem [shape: f32[1,64], index: 6, kind: input, shape index: {}]   ;;  %s1242_s7 = inlined_call_operand.vmem [shape: f32[2,16,64], index: 7, kind: output, shape index: {}]  }
   0x1 LB: > { %s778_s25 = sadd.s32 4294967295, %s1040_s24   ;;  %p782_p0 = scmp.ge.s32.totalorder %s1040_s24, 1  ;;  %s1040_s24 = sphi %s1083_s24, %s17_s24  }
   0x2   : > { %p237_p1 = scmp.lt.s32.totalorder %s1040_s24, 3 }
   0x4   : > { %p238_p2 = pnand %p782_p0, %p237_p1 }
   0x5   : > { %p269_p3 = scmp.lt.s32.totalorder (!%p238_p2), %s778_s25, 1 }
   0x6   : > { %241 = sbr.rel (%p238_p2) target bundleno = 370 (0x172), region = 48 }
   0xb   : > { %v999_v0 = vld [vmem:[%s1236_s1 + $0x78] sm:$0xff]  ;;  %v998_v3 = vld [vmem:[%s1236_s1 + $0x70] sm:$0xff]  ;;  %v997_v6 = vld [vmem:[%s1236_s1 + $0x68] sm:$0xff]  ;;  %s1244_s25 = smov (!%p269_p3, %s778_s25), 1  ;;  %vm541_vm0 = vcmask 516096   ;;  %v1042_v33 = vmov 0.0  }
   0xc   : > { %v991_v1 = vld [vmem:[%s1236_s1 + $0x38] sm:$0xff]  ;;  %367 = vmatpush.bf16.msra.mxu0 %v999_v0  ;;  %v990_v4 = vld [vmem:[%s1236_s1 + $0x30] sm:$0xff]  ;;  %v989_v7 = vld [vmem:[%s1236_s1 + $0x28] sm:$0xff]  ;;  %s1020_s16 = smul.u32 24, %s1244_s25  ;;  %543 = vst.msk [vmem:[#allocation2 + $0x11] sm:$0x1] %vm541_vm0, %v1042_v33 }
   0xd   : > { %v1007_v2 = vld [vmem:[%s1236_s1 + $0xb8] sm:$0xff]  ;;  %429 = vmatpush.bf16.msra.mxu1 %v991_v1  ;;  %v1006_v5 = vld [vmem:[%s1236_s1 + $0xb0] sm:$0xff]  ;;  %v1005_v8 = vld [vmem:[%s1236_s1 + $0xa8] sm:$0xff]  ;;  %542 = vst.msk [vmem:[#allocation2] sm:$0x1] %vm541_vm0, %v1042_v33  ;;  %vm544_vm1 = vcmask 523264  }
   0xe   : > { %511 = vmatpush.bf16.msra.mxu2 %v1007_v2  ;;  %v996_v9 = vld [vmem:[%s1236_s1 + $0x60] sm:$0xff]  ;;  %v995_v12 = vld [vmem:[%s1236_s1 + $0x58] sm:$0xff]  ;;  %v994_v15 = vld [vmem:[%s1236_s1 + $0x50] sm:$0xff]  ;;  %s273_s27 = scalar_lea.vmem %s1235_s0, %s1020_s16  ;;  %s983_s26 = sshll.u32 %s1244_s25, 4 }
   0xf   : > { %v988_v10 = vld [vmem:[%s1236_s1 + $0x20] sm:$0xff]  ;;  %v987_v13 = vld [vmem:[%s1236_s1 + $0x18] sm:$0xff]  ;;  %v986_v16 = vld [vmem:[%s1236_s1 + $0x10] sm:$0xff]  ;;  %s278_s29 = scalar_lea.vmem %s1242_s7, %s983_s26 }
  0x10   : > { %368 = vmatpush.bf16.msra.mxu0 %v998_v3  ;;  %v1004_v11 = vld [vmem:[%s1236_s1 + $0xa0] sm:$0xff]  ;;  %v1003_v14 = vld [vmem:[%s1236_s1 + $0x98] sm:$0xff]  ;;  %v1002_v17 = vld [vmem:[%s1236_s1 + $0x90] sm:$0xff] }
  0x11   : > { %430 = vmatpush.bf16.msra.mxu1 %v990_v4  ;;  %v993_v18 = vld [vmem:[%s1236_s1 + $0x48] sm:$0xff]  ;;  %v992_v21 = vld [vmem:[%s1236_s1 + $0x40] sm:$0xff]  ;;  %v1015_v34 = vld [vmem:[%s1239_s4 + $0x38] sm:$0xff] }
  0x12   : > { %512 = vmatpush.bf16.msra.mxu2 %v1006_v5  ;;  %v985_v19 = vld [vmem:[%s1236_s1 + $0x8] sm:$0xff]  ;;  %v984_v22 = vld [vmem:[%s1236_s1] sm:$0xff]  ;;  %v1019_v35 = vld [vmem:[%s1239_s4 + $0x58] sm:$0xff]  ;;  %601 = vmatpush.bf16.msra.mxu3 %v1015_v34 }
  0x13   : > { %v1001_v20 = vld [vmem:[%s1236_s1 + $0x88] sm:$0xff]  ;;  %v280_v25 = vld [vmem:[%s273_s27] sm:$0xff]  ;;  %v1014_v36 = vld [vmem:[%s1239_s4 + $0x30] sm:$0xff] }
  0x14   : > { %369 = vmatpush.bf16.msra.mxu0 %v997_v6  ;;  %v299_v23 = vld [vmem:[%s273_s27 + $0x1] sm:$0xff]  ;;  %v300_v24 = vld [vmem:[%s273_s27 + $0x9] sm:$0xff]  ;;  %v1011_v44 = vld [vmem:[%s1239_s4 + $0x18] sm:$0xff] }
  0x15   : > { %431 = vmatpush.bf16.msra.mxu1 %v989_v7  ;;  %v281_v26 = vld [vmem:[%s273_s27 + $0x8] sm:$0xff]  ;;  %v1000_v27 = vld [vmem:[%s1236_s1 + $0x80] sm:$0xff]  ;;  %v301_v30 = vpack.c.bf16 %v300_v24, %v299_v23  ;;  %v1018_v37 = vld [vmem:[%s1239_s4 + $0x50] sm:$0xff] }
  0x16   : > { %513 = vmatpush.bf16.msra.mxu2 %v1005_v8  ;;  %v443_v28 = vld [vmem:[%s273_s27 + $0x2] sm:$0xff]  ;;  %v444_v29 = vld [vmem:[%s273_s27 + $0xa] sm:$0xff]  ;;  %v282_v31 = vpack.c.bf16 %v281_v26, %v280_v25  ;;  %602 = vmatpush.bf16.msra.mxu3 %v1014_v36  ;;  %v1030_v47 = vld [vmem:[%s1237_s2] ss:$0 sm:$0xff] }
  0x17   : > { %v445_v32 = vpack.c.bf16 %v444_v29, %v443_v28  ;;  %v1013_v38 = vld [vmem:[%s1239_s4 + $0x28] sm:$0xff]  ;;  %v1012_v40 = vld [vmem:[%s1239_s4 + $0x20] sm:$0xff]  ;;  %v1010_v45 = vld [vmem:[%s1239_s4 + $0x10] sm:$0xff] }
  0x18   : > { %370 = vmatpush.bf16.msra.mxu0 %v996_v9  ;;  %v1017_v39 = vld [vmem:[%s1239_s4 + $0x48] sm:$0xff]  ;;  %v1016_v41 = vld [vmem:[%s1239_s4 + $0x40] sm:$0xff] }
  0x19   : > { %432 = vmatpush.bf16.msra.mxu1 %v988_v10  ;;  %v1009_v49 = vld [vmem:[%s1239_s4 + $0x8] sm:$0xff]  ;;  %v1031_v51 = vld [vmem:[%s1238_s3] ss:$0 sm:$0xff] }
  0x1a   : > { %514 = vmatpush.bf16.msra.mxu2 %v1004_v11  ;;  %603 = vmatpush.bf16.msra.mxu3 %v1013_v38  ;;  %v1008_v55 = vld [vmem:[%s1239_s4] sm:$0xff] }
  0x1c   : > { %371 = vmatpush.bf16.msra.mxu0 %v995_v12 }
  0x1d   : > { %433 = vmatpush.bf16.msra.mxu1 %v987_v13 }
  0x1e   : > { %515 = vmatpush.bf16.msra.mxu2 %v1003_v14  ;;  %604 = vmatpush.bf16.msra.mxu3 %v1012_v40  ;;  %v1032_v14 = vld [vmem:[%s1240_s5] ss:$0 sm:$0xff] }
  0x20   : > { %372 = vmatpush.bf16.msra.mxu0 %v994_v15 }
  0x21   : > { %434 = vmatpush.bf16.msra.mxu1 %v986_v16  ;;  %v1033_v16 = vld [vmem:[%s1241_s6] ss:$0 sm:$0xff] }
  0x22   : > { %516 = vmatpush.bf16.msra.mxu2 %v1002_v17  ;;  %642 = vmatpush.bf16.msrb.mxu3 %v1011_v44 }
  0x24   : > { %373 = vmatpush.bf16.msra.mxu0 %v993_v18 }
  0x25   : > { %435 = vmatpush.bf16.msra.mxu1 %v985_v19 }
  0x26   : > { %517 = vmatpush.bf16.msra.mxu2 %v1001_v20  ;;  %643 = vmatpush.bf16.msrb.mxu3 %v1010_v45 }
  0x28   : > { %374 = vmatpush.bf16.msra.mxu0 %v992_v21 }
  0x29   : > { %436 = vmatpush.bf16.msra.mxu1 %v984_v22 }
  0x2a   : > { %518 = vmatpush.bf16.msra.mxu2 %v1000_v27  ;;  %644 = vmatpush.bf16.msrb.mxu3 %v1009_v49 }
  0x2b   : > { %375 = vmatmul.bf16.vlgmr.msra.gmra.mxu0 %v301_v30 }
  0x2c   : > { %437 = vmatmul.bf16.vlgmr.msra.gmra.mxu1 %v282_v31  ;;  %695 = vmatpush.bf16.msrb.mxu0 %v1019_v35 }
  0x2d   : > { %519 = vmatmul.bf16.vlgmr.msra.gmra.mxu2 %v445_v32 }
  0x2e   : > { %645 = vmatpush.bf16.msrb.mxu3 %v1008_v55 }
  0x30   : > { %696 = vmatpush.bf16.msrb.mxu0 %v1018_v37 }
  0x34   : > { %697 = vmatpush.bf16.msrb.mxu0 %v1017_v39 }
  0x38   : > { %698 = vmatpush.bf16.msrb.mxu0 %v1016_v41 }
  0xa8   : > { %v376_v42 = vpop.f32.mrf.mxu0 }
  0xa9   : > { %v438_v43 = vpop.f32.mrf.mxu1 }
  0xaa   : > { %v439_v46 = vadd.f32 %v438_v43, %v376_v42 }
  0xb0   : > { %v520_v48 = vpop.f32.mrf.mxu2  ;;  %v378_v53 = vpop.f32.mrf.mxu0 }
  0xb1   : > { %v525_v50 = vadd.f32 %v520_v48, %v439_v46  ;;  %v440_v54 = vpop.f32.mrf.mxu1 }
  0xb2   : > { %v441_v58 = vadd.f32 %v440_v54, %v378_v53 }
  0xb3   : > { %v531_v52 = vmul.f32 %v1030_v47, %v525_v50 }
  0xb5   : > { %v537_v56 = vadd.f32 %v1031_v51, %v531_v52 }
  0xb7   : > { %v539_v57 = vmax.f32 %v537_v56, 0.0 }
  0xb8   : > { %v522_v59 = vpop.f32.mrf.mxu2 }
  0xb9   : > { %545 = vst.msk [vmem:[#allocation2 + $0x1] sm:$0xff] %vm544_vm1, %v539_v57  ;;  %v526_v60 = vadd.f32 %v522_v59, %v441_v58 }
  0xbb   : > { %v532_v61 = vmul.f32 %v1030_v47, %v526_v60 }
  0xbd   : > { %v538_v62 = vadd.f32 %v1031_v51, %v532_v61 }
  0xbf   : > { %v540_v63 = vmax.f32 %v538_v62, 0.0 }
  0xc0   : > { %v558_v0 = vld [vmem:[#allocation2 + $0x1] sm:$0xff] }
  0xc1   : > { %546 = vst.msk [vmem:[#allocation2 + $0x9] sm:$0xff] %vm544_vm1, %v540_v63  ;;  %v547_v7 = vld [vmem:[#allocation2] sm:$0xff] }
  0xc8   : > { %v559_v1 = vld [vmem:[#allocation2 + $0x9] sm:$0xff] }
  0xc9   : > { %v652_v2 = vld [vmem:[#allocation2 + $0x2] sm:$0xff]  ;;  %v653_v3 = vld [vmem:[#allocation2 + $0xa] sm:$0xff]  ;;  %v560_v4 = vpack.c.bf16 %v559_v1, %v558_v0 }
  0xca   : > { %v654_v5 = vpack.c.bf16 %v653_v3, %v652_v2  ;;  %v548_v6 = vld [vmem:[#allocation2 + $0x8] sm:$0xff] }
  0xcb   : > { %938 = vmatmul.msk.bf16.vlgmr.msra.gmra.mxu3 %vm544_vm1, %v560_v4  ;;  %v549_v8 = vpack.c.bf16 %v548_v6, %v547_v7 }
  0xcc   : > { %980 = vmatmul.msk.bf16.vlgmr.msrb.gmra.mxu0 %vm544_vm1, %v654_v5 }
  0xdb   : > { %955 = vmatmul.msk.bf16.vlgmr.msrb.gmra.mxu3 %vm544_vm1, %v549_v8 }
 0x149   : > { %v700_v11 = vpop.f32.mrf.mxu0 }
 0x14e   : > { %v606_v9 = vpop.f32.mrf.mxu3 }
 0x151   : > { %v702_v22 = vpop.f32.mrf.mxu0 }
 0x156   : > { %v608_v10 = vpop.f32.mrf.mxu3 }
 0x15e   : > { %v647_v12 = vpop.f32.mrf.mxu3 }
 0x15f   : > { %v648_v13 = vadd.f32 %v647_v12, %v606_v9 }
 0x161   : > { %v705_v15 = vadd.f32 %v700_v11, %v648_v13 }
 0x163   : > { %v711_v17 = vmul.f32 %v1032_v14, %v705_v15 }
 0x165   : > { %v717_v18 = vadd.f32 %v1033_v16, %v711_v17 }
 0x166   : > { %v649_v19 = vpop.f32.mrf.mxu3 }
 0x167   : > { %v719_v20 = vmax.f32 %v717_v18, 0.0  ;;  %v650_v21 = vadd.f32 %v649_v19, %v608_v10 }
 0x169   : > { %721 = vst.msk [vmem:[%s278_s29] sm:$0xff] %vm544_vm1, %v719_v20  ;;  %v706_v23 = vadd.f32 %v702_v22, %v650_v21 }
 0x16b   : > { %v712_v24 = vmul.f32 %v1032_v14, %v706_v23 }
 0x16d   : > { %v718_v25 = vadd.f32 %v1033_v16, %v712_v24 }
 0x16f   : > { %v720_v26 = vmax.f32 %v718_v25, 0.0 }
 0x171   : > { %722 = vst.msk [vmem:[%s278_s29 + $0x8] sm:$0xff] %vm544_vm1, %v720_v26 }
 0x172 PF: > { %s17_s24 = sadd.s32 1, %s1040_s24  }
 0x173   : > { %p14_p4 = scmp.ge.s32.totalorder %s17_s24, 4  }
 0x175   :  { %16 = sbr.rel (!%p14_p4) target bundleno = 1 (0x1), region = 82 }

</bundles_post_ra>
